<compile_context>
chip_gen: v5e
topology: v5e:2x2
jax: 0.10.0
libtpu: 0.0.40
codegen_flags: <defaults>
</compile_context>

<pallas_src>
import functools
import math

import jax
import jax.numpy as jnp
import numpy as np
from jax.experimental import pallas as pl
from jax.experimental.pallas import tpu as pltpu


def _cnn_sentiment_kernel(filter_sizes, n_filters,
                          emb_ref, wcat_ref, bcat_ref,
                          fcw_ref, fcb_ref, outw_ref, outb_ref,
                          o_ref):
    Bt, S, E = emb_ref.shape

    # One wide MXU matmul for the entire conv stack (bf16 in, f32 accumulate).
    emb2d = emb_ref[...].reshape(Bt * S, E)                       # bf16 [Bt*S, E]
    y = jnp.dot(emb2d, wcat_ref[...],
                preferred_element_type=jnp.float32)               # f32 [Bt*S, 128]
    y = y.reshape(Bt, S, y.shape[-1])

    # Realize each conv's window sum with static shifted slices + adds (VPU),
    # then max-pool over time (XLU).  `col` walks the packed weight columns in
    # the same (filter, k) order used when packing in the wrapper.
    pooled = []
    col = 0
    for fs in filter_sizes:
        T = S - fs + 1
        acc = y[:, 0:T, col:col + n_filters]                      # init from first slice
        col += n_filters
        for k in range(1, fs):
            acc = acc + y[:, k:k + T, col:col + n_filters]
            col += n_filters
        pooled.append(jnp.max(acc, axis=1))                       # [Bt, n_filters]

    cat = jnp.concatenate(pooled, axis=1)                         # [Bt, 5*n_filters]
    # Hoisted conv bias + ReLU (exactly equivalent to bias/ReLU before the
    # max-pool).  Dropout == identity in eval mode.
    cat = jnp.maximum(cat + bcat_ref[...], 0.0)

    h = jnp.dot(cat, fcw_ref[...],
                preferred_element_type=jnp.float32) + fcb_ref[...]       # [Bt, 64]
    out = jnp.dot(h, outw_ref[...],
                  preferred_element_type=jnp.float32) + outb_ref[...]    # [Bt, 128]
    o_ref[0] = out


def bert_cnn_sentiment_forward(embedded, params, filter_sizes, n_filters,
                               output_dim, block_b=8):
    """embedded: [B, S, E] float32 (output of the frozen BERT encoder)."""
    B, S, E = embedded.shape
    conv_ws, conv_bs, fc_w, fc_b, out_w, out_b = params

    # --- pack all conv weights into a single [E, 128] bf16 slab (one DMA,
    #     lane-dense MXU N), columns ordered (filter, k, out_channel).
    w_cols = [w[k] for w in conv_ws for k in range(w.shape[0])]   # each [E, n_filters]
    wcat = jnp.concatenate(w_cols, axis=1)                        # [E, 15*n_filters]
    lanes = ((wcat.shape[1] + 127) // 128) * 128
    wcat = jnp.pad(wcat, ((0, 0), (0, lanes - wcat.shape[1]))).astype(jnp.bfloat16)

    # --- pack conv biases in the same filter order as the concatenated pool.
    bcat = jnp.concatenate([b.reshape(1, -1) for b in conv_bs], axis=1)  # [1, 5*nf]

    # --- lane-dense output: pad the final linear to 128 columns.
    OUT_PAD = 128
    out_w_p = jnp.pad(out_w, ((0, 0), (0, OUT_PAD - out_w.shape[1])))
    out_b_p = jnp.pad(out_b, ((0, 0), (0, OUT_PAD - out_b.shape[1])))

    emb_bf = embedded.astype(jnp.bfloat16)

    # --- batch grid; weights stay resident across grid steps.
    Bt = max(1, math.gcd(B, block_b))
    grid = (B // Bt,)

    kernel = functools.partial(_cnn_sentiment_kernel, tuple(filter_sizes), n_filters)

    res = pl.pallas_call(
        kernel,
        out_shape=jax.ShapeDtypeStruct((B // Bt, Bt, OUT_PAD), jnp.float32),
        grid=grid,
        in_specs=[
            pl.BlockSpec((Bt, S, E), lambda b: (b, 0, 0)),        # embedded tile (bf16)
            pl.BlockSpec(wcat.shape, lambda b: (0, 0)),           # packed conv W
            pl.BlockSpec(bcat.shape, lambda b: (0, 0)),           # packed conv b
            pl.BlockSpec(fc_w.shape, lambda b: (0, 0)),
            pl.BlockSpec(fc_b.shape, lambda b: (0, 0)),
            pl.BlockSpec(out_w_p.shape, lambda b: (0, 0)),
            pl.BlockSpec(out_b_p.shape, lambda b: (0, 0)),
        ],
        out_specs=pl.BlockSpec((1, Bt, OUT_PAD), lambda b: (b, 0, 0)),
        compiler_params=pltpu.CompilerParams(
            dimension_semantics=("parallel",)),
    )(emb_bf, wcat, bcat, fc_w, fc_b, out_w_p, out_b_p)

    return res.reshape(B, OUT_PAD)[:, :output_dim]


def init_params(key, filter_sizes, n_filters, embedding_dim, output_dim):
    """Deterministic synthetic parameters with the same shapes as the nn.Module."""
    ks = jax.random.split(key, 2 * len(filter_sizes) + 4)
    conv_ws, conv_bs = [], []
    for i, fs in enumerate(filter_sizes):
        # PyTorch Conv2d weight is [n_filters, 1, fs, E]; stored here as [fs, E, n_filters].
        w = 0.1 * jax.random.normal(ks[2 * i], (fs, embedding_dim, n_filters), jnp.float32)
        b = 0.1 * jax.random.normal(ks[2 * i + 1], (1, n_filters), jnp.float32)
        conv_ws.append(w)
        conv_bs.append(b)
    hid = 64
    cat_dim = len(filter_sizes) * n_filters
    # nn.Linear weight is [out, in]; stored here pre-transposed as [in, out].
    fc_w = 0.1 * jax.random.normal(ks[-4], (cat_dim, hid), jnp.float32)
    fc_b = 0.1 * jax.random.normal(ks[-3], (1, hid), jnp.float32)
    out_w = 0.1 * jax.random.normal(ks[-2], (hid, output_dim), jnp.float32)
    out_b = 0.1 * jax.random.normal(ks[-1], (1, output_dim), jnp.float32)
    return conv_ws, conv_bs, fc_w, fc_b, out_w, out_b


def reference_forward(embedded, params, filter_sizes, use_bf16_matmul=True):
    """Pure-JAX reference mirroring the PyTorch forward (eval mode)."""
    conv_ws, conv_bs, fc_w, fc_b, out_w, out_b = params
    B, S, E = embedded.shape
    mm_dtype = jnp.bfloat16 if use_bf16_matmul else jnp.float32
    emb = embedded.astype(mm_dtype)
    pooled = []
    for w, b, fs in zip(conv_ws, conv_bs, filter_sizes):
        T = S - fs + 1
        acc = jnp.zeros((B, T, w.shape[-1]), jnp.float32)
        for k in range(fs):
            acc = acc + jnp.einsum('bte,ef->btf',
                                   emb[:, k:k + T, :], w[k].astype(mm_dtype),
                                   preferred_element_type=jnp.float32)
        acc = jax.nn.relu(acc + b.reshape(1, 1, -1))
        pooled.append(jnp.max(acc, axis=1))
    cat = jnp.concatenate(pooled, axis=1)
    h = cat @ fc_w + fc_b
    return h @ out_w + out_b


if __name__ == "__main__":
    # Small, module-consistent shapes (BERT hidden size stand-in E=32).
    B, S, E = 8, 16, 32
    n_filters = 8
    filter_sizes = (1, 2, 3, 4, 5)
    output_dim = 3

    key = jax.random.PRNGKey(0)
    k_emb, k_par = jax.random.split(key)
    embedded = jax.random.normal(k_emb, (B, S, E), jnp.float32)  # stand-in for bert(text)[0]
    params = init_params(k_par, filter_sizes, n_filters, E, output_dim)

    out = bert_cnn_sentiment_forward(embedded, params, filter_sizes, n_filters,
                                     output_dim, block_b=2)
    out = jax.block_until_ready(out)

    # Primary check: reference with the same bf16 matmul inputs (tight).
    ref_bf16 = reference_forward(embedded, params, filter_sizes, use_bf16_matmul=True)
    np.testing.assert_allclose(np.asarray(out), np.asarray(ref_bf16),
                               rtol=1e-2, atol=1e-2)

    # Sanity check vs full-f32 module semantics (loose; absorbs bf16 quantization).
    ref_f32 = reference_forward(embedded, params, filter_sizes, use_bf16_matmul=False)
    np.testing.assert_allclose(np.asarray(out), np.asarray(ref_f32),
                               rtol=1e-1, atol=1e-1)

    print("KERNEL_OK")
</pallas_src>

<mosaic_0001>
module attributes {stable_mosaic.version = 11 : i64} {
  func.func @_cnn_sentiment_kernel(%arg0: i32, %arg1: memref<2x16x32xbf16, #tpu.memory_space<vmem>>, %arg2: memref<32x128xbf16, #tpu.memory_space<vmem>>, %arg3: memref<1x40xf32, #tpu.memory_space<vmem>>, %arg4: memref<40x64xf32, #tpu.memory_space<vmem>>, %arg5: memref<1x64xf32, #tpu.memory_space<vmem>>, %arg6: memref<64x128xf32, #tpu.memory_space<vmem>>, %arg7: memref<1x128xf32, #tpu.memory_space<vmem>>, %arg8: memref<1x2x128xf32, #tpu.memory_space<vmem>>) attributes {dimension_semantics = [#tpu.dimension_semantics<parallel>], iteration_bounds = array<i64: 4>, scalar_prefetch = 0 : i64, scratch_operands = 0 : i64, tpu.core_type = #tpu.core_type<tc>, window_params = [{transform_indices = @transform_0, window_bounds = array<i64: 2, 16, 32>}, {pipeline_mode = #tpu.pipeline_mode<synchronous>, transform_indices = @transform_1, window_bounds = array<i64: 32, 128>}, {pipeline_mode = #tpu.pipeline_mode<synchronous>, transform_indices = @transform_2, window_bounds = array<i64: 1, 40>}, {pipeline_mode = #tpu.pipeline_mode<synchronous>, transform_indices = @transform_3, window_bounds = array<i64: 40, 64>}, {pipeline_mode = #tpu.pipeline_mode<synchronous>, transform_indices = @transform_4, window_bounds = array<i64: 1, 64>}, {pipeline_mode = #tpu.pipeline_mode<synchronous>, transform_indices = @transform_5, window_bounds = array<i64: 64, 128>}, {pipeline_mode = #tpu.pipeline_mode<synchronous>, transform_indices = @transform_6, window_bounds = array<i64: 1, 128>}, {transform_indices = @transform_7, window_bounds = array<i64: 1, 2, 128>}]} {
    %c0 = arith.constant 0 : index
    %c0_0 = arith.constant 0 : index
    %c0_1 = arith.constant 0 : index
    %0 = vector.load %arg1[%c0, %c0_0, %c0_1] : memref<2x16x32xbf16, #tpu.memory_space<vmem>>, vector<2x16x32xbf16>
    %1 = vector.shape_cast %0 : vector<2x16x32xbf16> to vector<32x32xbf16>
    %c0_2 = arith.constant 0 : index
    %c0_3 = arith.constant 0 : index
    %2 = vector.load %arg2[%c0_2, %c0_3] : memref<32x128xbf16, #tpu.memory_space<vmem>>, vector<32x128xbf16>
    %cst = arith.constant dense<0.000000e+00> : vector<32x128xf32>
    %3 = tpu.matmul %1, %2, %cst {dimension_numbers = #tpu.dot_dimension_numbers<[1], [0], [0], [1], [0, 0, 1, 1], [], []>} : vector<32x32xbf16>, vector<32x128xbf16>, vector<32x128xf32> -> vector<32x128xf32>
    %4 = vector.shape_cast %3 : vector<32x128xf32> to vector<2x16x128xf32>
    %5 = vector.extract_strided_slice %4 {offsets = [0, 0, 0], sizes = [2, 16, 8], strides = [1, 1, 1]} : vector<2x16x128xf32> to vector<2x16x8xf32>
    %cst_4 = arith.constant dense<0xFF800000> : vector<2x8xf32>
    %6 = vector.multi_reduction <maximumf>, %5, %cst_4 [1] : vector<2x16x8xf32> to vector<2x8xf32>
    %7 = vector.extract_strided_slice %4 {offsets = [0, 0, 8], sizes = [2, 15, 8], strides = [1, 1, 1]} : vector<2x16x128xf32> to vector<2x15x8xf32>
    %8 = vector.extract_strided_slice %4 {offsets = [0, 1, 16], sizes = [2, 15, 8], strides = [1, 1, 1]} : vector<2x16x128xf32> to vector<2x15x8xf32>
    %9 = arith.addf %7, %8 : vector<2x15x8xf32>
    %cst_5 = arith.constant dense<0xFF800000> : vector<2x8xf32>
    %10 = vector.multi_reduction <maximumf>, %9, %cst_5 [1] : vector<2x15x8xf32> to vector<2x8xf32>
    %11 = vector.extract_strided_slice %4 {offsets = [0, 0, 24], sizes = [2, 14, 8], strides = [1, 1, 1]} : vector<2x16x128xf32> to vector<2x14x8xf32>
    %12 = vector.extract_strided_slice %4 {offsets = [0, 1, 32], sizes = [2, 14, 8], strides = [1, 1, 1]} : vector<2x16x128xf32> to vector<2x14x8xf32>
    %13 = arith.addf %11, %12 : vector<2x14x8xf32>
    %14 = vector.extract_strided_slice %4 {offsets = [0, 2, 40], sizes = [2, 14, 8], strides = [1, 1, 1]} : vector<2x16x128xf32> to vector<2x14x8xf32>
    %15 = arith.addf %13, %14 : vector<2x14x8xf32>
    %cst_6 = arith.constant dense<0xFF800000> : vector<2x8xf32>
    %16 = vector.multi_reduction <maximumf>, %15, %cst_6 [1] : vector<2x14x8xf32> to vector<2x8xf32>
    %17 = vector.extract_strided_slice %4 {offsets = [0, 0, 48], sizes = [2, 13, 8], strides = [1, 1, 1]} : vector<2x16x128xf32> to vector<2x13x8xf32>
    %18 = vector.extract_strided_slice %4 {offsets = [0, 1, 56], sizes = [2, 13, 8], strides = [1, 1, 1]} : vector<2x16x128xf32> to vector<2x13x8xf32>
    %19 = arith.addf %17, %18 : vector<2x13x8xf32>
    %20 = vector.extract_strided_slice %4 {offsets = [0, 2, 64], sizes = [2, 13, 8], strides = [1, 1, 1]} : vector<2x16x128xf32> to vector<2x13x8xf32>
    %21 = arith.addf %19, %20 : vector<2x13x8xf32>
    %22 = vector.extract_strided_slice %4 {offsets = [0, 3, 72], sizes = [2, 13, 8], strides = [1, 1, 1]} : vector<2x16x128xf32> to vector<2x13x8xf32>
    %23 = arith.addf %21, %22 : vector<2x13x8xf32>
    %cst_7 = arith.constant dense<0xFF800000> : vector<2x8xf32>
    %24 = vector.multi_reduction <maximumf>, %23, %cst_7 [1] : vector<2x13x8xf32> to vector<2x8xf32>
    %25 = vector.extract_strided_slice %4 {offsets = [0, 0, 80], sizes = [2, 12, 8], strides = [1, 1, 1]} : vector<2x16x128xf32> to vector<2x12x8xf32>
    %26 = vector.extract_strided_slice %4 {offsets = [0, 1, 88], sizes = [2, 12, 8], strides = [1, 1, 1]} : vector<2x16x128xf32> to vector<2x12x8xf32>
    %27 = arith.addf %25, %26 : vector<2x12x8xf32>
    %28 = vector.extract_strided_slice %4 {offsets = [0, 2, 96], sizes = [2, 12, 8], strides = [1, 1, 1]} : vector<2x16x128xf32> to vector<2x12x8xf32>
    %29 = arith.addf %27, %28 : vector<2x12x8xf32>
    %30 = vector.extract_strided_slice %4 {offsets = [0, 3, 104], sizes = [2, 12, 8], strides = [1, 1, 1]} : vector<2x16x128xf32> to vector<2x12x8xf32>
    %31 = arith.addf %29, %30 : vector<2x12x8xf32>
    %32 = vector.extract_strided_slice %4 {offsets = [0, 4, 112], sizes = [2, 12, 8], strides = [1, 1, 1]} : vector<2x16x128xf32> to vector<2x12x8xf32>
    %33 = arith.addf %31, %32 : vector<2x12x8xf32>
    %cst_8 = arith.constant dense<0xFF800000> : vector<2x8xf32>
    %34 = vector.multi_reduction <maximumf>, %33, %cst_8 [1] : vector<2x12x8xf32> to vector<2x8xf32>
    %35 = tpu.concatenate %6, %10, %16, %24, %34 in 1 : vector<2x8xf32>, vector<2x8xf32>, vector<2x8xf32>, vector<2x8xf32>, vector<2x8xf32> -> vector<2x40xf32>
    %c0_9 = arith.constant 0 : index
    %c0_10 = arith.constant 0 : index
    %36 = vector.load %arg3[%c0_9, %c0_10] : memref<1x40xf32, #tpu.memory_space<vmem>>, vector<1x40xf32>
    %37 = vector.broadcast %36 : vector<1x40xf32> to vector<2x40xf32>
    %38 = arith.addf %35, %37 : vector<2x40xf32>
    %cst_11 = arith.constant 0.000000e+00 : f32
    %39 = vector.broadcast %cst_11 : f32 to vector<2x40xf32>
    %40 = arith.maximumf %38, %39 : vector<2x40xf32>
    %c0_12 = arith.constant 0 : index
    %c0_13 = arith.constant 0 : index
    %41 = vector.load %arg4[%c0_12, %c0_13] : memref<40x64xf32, #tpu.memory_space<vmem>>, vector<40x64xf32>
    %cst_14 = arith.constant dense<0.000000e+00> : vector<2x64xf32>
    %42 = tpu.matmul %40, %41, %cst_14 {dimension_numbers = #tpu.dot_dimension_numbers<[1], [0], [0], [1], [0, 0, 1, 1], [], []>} : vector<2x40xf32>, vector<40x64xf32>, vector<2x64xf32> -> vector<2x64xf32>
    %c0_15 = arith.constant 0 : index
    %c0_16 = arith.constant 0 : index
    %43 = vector.load %arg5[%c0_15, %c0_16] : memref<1x64xf32, #tpu.memory_space<vmem>>, vector<1x64xf32>
    %44 = vector.broadcast %43 : vector<1x64xf32> to vector<2x64xf32>
    %45 = arith.addf %42, %44 : vector<2x64xf32>
    %c0_17 = arith.constant 0 : index
    %c0_18 = arith.constant 0 : index
    %46 = vector.load %arg6[%c0_17, %c0_18] : memref<64x128xf32, #tpu.memory_space<vmem>>, vector<64x128xf32>
    %cst_19 = arith.constant dense<0.000000e+00> : vector<2x128xf32>
    %47 = tpu.matmul %45, %46, %cst_19 {dimension_numbers = #tpu.dot_dimension_numbers<[1], [0], [0], [1], [0, 0, 1, 1], [], []>} : vector<2x64xf32>, vector<64x128xf32>, vector<2x128xf32> -> vector<2x128xf32>
    %c0_20 = arith.constant 0 : index
    %c0_21 = arith.constant 0 : index
    %48 = vector.load %arg7[%c0_20, %c0_21] : memref<1x128xf32, #tpu.memory_space<vmem>>, vector<1x128xf32>
    %49 = vector.broadcast %48 : vector<1x128xf32> to vector<2x128xf32>
    %50 = arith.addf %47, %49 : vector<2x128xf32>
    %c0_22 = arith.constant 0 : index
    %c0_23 = arith.constant 0 : index
    %c0_24 = arith.constant 0 : index
    %51 = vector.load %arg8[%c0_22, %c0_23, %c0_24] : memref<1x2x128xf32, #tpu.memory_space<vmem>>, vector<1x2x128xf32>
    %52 = vector.shape_cast %51 : vector<1x2x128xf32> to vector<2x128xf32>
    %53 = vector.shape_cast %50 : vector<2x128xf32> to vector<1x2x128xf32>
    tpu.vector_store %arg8[%c0_22, %c0_23, %c0_24], %53 {strides = array<i32>} : memref<1x2x128xf32, #tpu.memory_space<vmem>>, vector<1x2x128xf32>,
    return
  }
  func.func @transform_0(%arg0: i32) -> (i32, i32, i32) {
    %c0_i32 = arith.constant 0 : i32
    %c0_i32_0 = arith.constant 0 : i32
    %c0_i32_1 = arith.constant 0 : i32
    return %arg0, %c0_i32, %c0_i32_0 : i32, i32, i32
  }
  func.func @transform_1(%arg0: i32) -> (i32, i32) {
    %c0_i32 = arith.constant 0 : i32
    %c0_i32_0 = arith.constant 0 : i32
    %c0_i32_1 = arith.constant 0 : i32
    return %c0_i32, %c0_i32_0 : i32, i32
  }
  func.func @transform_2(%arg0: i32) -> (i32, i32) {
    %c0_i32 = arith.constant 0 : i32
    %c0_i32_0 = arith.constant 0 : i32
    %c0_i32_1 = arith.constant 0 : i32
    return %c0_i32, %c0_i32_0 : i32, i32
  }
  func.func @transform_3(%arg0: i32) -> (i32, i32) {
    %c0_i32 = arith.constant 0 : i32
    %c0_i32_0 = arith.constant 0 : i32
    %c0_i32_1 = arith.constant 0 : i32
    return %c0_i32, %c0_i32_0 : i32, i32
  }
  func.func @transform_4(%arg0: i32) -> (i32, i32) {
    %c0_i32 = arith.constant 0 : i32
    %c0_i32_0 = arith.constant 0 : i32
    %c0_i32_1 = arith.constant 0 : i32
    return %c0_i32, %c0_i32_0 : i32, i32
  }
  func.func @transform_5(%arg0: i32) -> (i32, i32) {
    %c0_i32 = arith.constant 0 : i32
    %c0_i32_0 = arith.constant 0 : i32
    %c0_i32_1 = arith.constant 0 : i32
    return %c0_i32, %c0_i32_0 : i32, i32
  }
  func.func @transform_6(%arg0: i32) -> (i32, i32) {
    %c0_i32 = arith.constant 0 : i32
    %c0_i32_0 = arith.constant 0 : i32
    %c0_i32_1 = arith.constant 0 : i32
    return %c0_i32, %c0_i32_0 : i32, i32
  }
  func.func @transform_7(%arg0: i32) -> (i32, i32, i32) {
    %c0_i32 = arith.constant 0 : i32
    %c0_i32_0 = arith.constant 0 : i32
    %c0_i32_1 = arith.constant 0 : i32
    return %arg0, %c0_i32, %c0_i32_0 : i32, i32, i32
  }
}

</mosaic_0001>

<bundles_post_ra>
// kernel: tpu_custom_call.1
= control target key start
LH: loop header
LB: loop body
LE: loop exit
PB: predicated region body
PF: predicated region fallthrough
CT: control target
= control target key end

     0   :  { %s1466_s0 = inlined_call_operand.hbm [shape: bf16[8,16,32], index: 0, kind: input, shape index: {}]   ;;  %s1467_s1 = inlined_call_operand.hbm [shape: bf16[32,128], index: 1, kind: input, shape index: {}]   ;;  %s1468_s2 = inlined_call_operand.vmem [shape: f32[1,40], index: 2, kind: input, shape index: {}]   ;;  %s1469_s3 = inlined_call_operand.hbm [shape: f32[40,64], index: 3, kind: input, shape index: {}]   ;;  %s1470_s4 = inlined_call_operand.vmem [shape: f32[1,64], index: 4, kind: input, shape index: {}]   ;;  %s1471_s5 = inlined_call_operand.hbm [shape: f32[64,128], index: 5, kind: input, shape index: {}]   ;;  %s1472_s6 = inlined_call_operand.vmem [shape: f32[1,128], index: 6, kind: input, shape index: {}]   ;;  %s1473_s7 = inlined_call_operand.hbm [shape: f32[4,2,128], index: 7, kind: output, shape index: {}]  }
   0x1   :  { %1476 = sst [smem:[#allocation15_spill]] %s1467_s1 }
   0x2   :  { %12 = vsyncpa [#allocation3], 0 }
   0x3   :  { %14 = vsyncpa [#allocation3 + $0x1], 0 }
   0x4   :  { %15 = vsyncpa [#allocation6], 0 }
   0x5   :  { %16 = vsyncpa [#allocation9], 0 }
   0x6   :  { %17 = vsyncpa [#allocation4], 0 }
   0x7   :  { %19 = vsyncpa [#allocation4 + $0x1], 0  ;;  %s1212_s24 = smov 0   ;;  %s1214_s25 = smov 0  }
   0x8   :  { %s1216_s26 = smov 0   ;;  %s1218_s27 = smov 0  }
   0x9 LB: > { %s1233_s28 = sadd.s32 4294967295, %s1158_s27   ;;  %s827_s29 = sadd.s32 4294967294, %s1158_s27   ;;  %s1158_s27 = sphi %s1218_s27, %s1489_s27   ;;  %s1154_s26 = sphi %s1216_s26, %s1488_s26   ;;  %s1150_s25 = sphi %s1214_s25, %s1487_s25   ;;  %s1146_s24 = sphi %s1212_s24, %s1486_s24  }
   0xa   : > { %p45_p0 = scmp.ne.s32.totalorder %s1150_s25, %s1146_s24  ;;  %p46_p1 = scmp.eq.s32.totalorder %s1233_s28, 0 }
   0xb   : > { %p195_p2 = scmp.eq.s32.totalorder %s1233_s28, 3  ;;  %p201_p3 = scmp.eq.s32.totalorder %s827_s29, 3 }
   0xc   : > { %p1242_p4 = por %p46_p1, %p45_p0  ;;  %p828_p5 = scmp.ge.s32.totalorder %s1158_s27, 1 }
   0xd   : > { %p1247_p6 = por %p201_p3, %p45_p0  ;;  %p208_p7 = scmp.lt.s32.totalorder %s1158_s27, 5 }
   0xe   : > { %s1479_s1 = sld [smem:[#allocation15_spill]]  ;;  %s1160_s13 = smov [#allocation5]  }
   0xf   : > { %p1255_p8 = pnand %p828_p5, %p208_p7  ;;  %s221_s14 = sshll.u32 %s1160_s13, 4  ;;  %s222_s14 = int_to_ptr.vmem [resolvable:$true] %s221_s14 }
  0x10   : > { %s236_s18 = sshll.u32 %s1469_s3, 4  ;;  %s1474_s19 = smov 64   ;;  %s237_s18 = int_to_ptr.hbm [resolvable:$true] %s236_s18 }
  0x11   : > { %p891_p9 = pneg %p1255_p8  ;;  %s1475_s20 = smov 4  }
  0x12   : > { %s1163_s21 = smov [#allocation7]   ;;  %s1164_s23 = smov 128  }
  0x13   : > { %p1263_p10 = pnand %p891_p9, %p46_p1  ;;  %s238_s22 = sshll.u32 %s1163_s21, 4  ;;  %s239_s22 = int_to_ptr.vmem [resolvable:$true] %s238_s22 }
  0x14   : > { %s219_s11 = sshll.u32 %s1479_s1, 4  ;;  %s1165_s29 = smov 8   ;;  %s220_s11 = int_to_ptr.hbm [resolvable:$true] %s219_s11 }
  0x15   : > { %894 = dma.hbm_to_vmem [thread:$0]  (!%p1263_p10), %s220_s11, 256, %s222_s14, [#allocation6], %s1474_s19, %s1474_s19, %s1475_s20  }
  0x16   : > { %897 = dma.hbm_to_vmem [thread:$0]  (!%p1263_p10), %s237_s18, 640, %s239_s22, [#allocation6], %s1164_s23, %s1164_s23, %s1165_s29  }
  0x17   : > { %s253_s13 = sshll.u32 %s1471_s5, 4  ;;  %s1166_s11 = smov [#allocation8]   ;;  %s254_s13 = int_to_ptr.hbm [resolvable:$true] %s253_s13 }
  0x18   : > { %s255_s14 = sshll.u32 %s1166_s11, 4  ;;  %s1283_s16 = sadd.s32 1, %s1158_s27   ;;  %s256_s14 = int_to_ptr.vmem [resolvable:$true] %s255_s14 }
  0x19   : > { %900 = dma.hbm_to_vmem [thread:$0]  (!%p1263_p10), %s254_s13, 1024, %s256_s14, [#allocation9], %s1164_s23, %s1164_s23, %s1165_s29  }
  0x1a   : > { %s29_s17 = ssub.s32 %s1158_s27, %s1283_s16  ;;  %s32_s21 = sadd.s32 1, %s1154_s26 }
  0x1b   : > { %p30_p11 = scmp.eq.s32.totalorder %s29_s17, 0  ;;  %p39_p12 = scmp.ne.s32.totalorder %s1154_s26, %s1150_s25 }
  0x1c   : > { %p40_p13 = scmp.eq.s32.totalorder %s1158_s27, 0  ;;  %p912_p3 = scmp.lt.s32.totalorder %s1158_s27, 4 }
  0x1d   : > { %s1292_s18 = scalar_select %p30_p11, %s1154_s26, %s32_s21  }
  0x1e   : > { %p1296_p0 = por %p195_p2, %p39_p12  ;;  %s272_s9 = sand.u32 1, %s1154_s26  }
  0x1f   : > { %s868_s10 = sshll.u32 %s1158_s27, 4  ;;  %p41_p5 = por %p40_p13, %p39_p12 }
  0x20   : > { %s833_s15 = sshll.u32 %s272_s9, 4  ;;  %s282_s13 = scalar_lea.hbm %s1466_s0, %s868_s10 }
  0x21   : > { %s283_s11 = sshll.u32 %s282_s13, 4  ;;  %s276_s14 = scalar_lea.vmem [#allocation2], %s833_s15  ;;  %s284_s11 = int_to_ptr.hbm [resolvable:$true] %s283_s11 }
  0x22   : > { %s285_s17 = sshll.u32 %s276_s14, 4  ;;  %p1306_p7 = pnand %p912_p3, %p41_p5  ;;  %s286_s17 = int_to_ptr.vmem [resolvable:$true] %s285_s17 }
  0x23   : > { %s273_s19 = scalar_lea.sflag [#allocation3], %s272_s9  ;;  %s1054_s20 = sshra.s32 %s284_s11, 4  ;;  %s1055_s20 = int_to_ptr.hbm [resolvable:$true] %s1054_s20 }
  0x24   : > { %s1056_s1 = scalar_lea.hbm %s1055_s20, 16  ;;  %p1058_p9 = pneg %p1306_p7 }
  0x25   : > { %p1057_p2 = scmp.ne.s32.totalorder %s1055_s20, %s1056_s1  ;;  %s1061_s15 = scalar_lea.hbm %s1466_s0, 64 }
  0x26   : > { %p1062_p12 = scmp.lt.s32.totalorder %s1055_s20, %s1466_s0  ;;  %p1063_p13 = scmp.lt.s32.totalorder %s1061_s15, %s1056_s1 }
  0x27   : > { %p1059_p10 = pnand %p1058_p9, %p1057_p2 }
  0x28   : > { %p1064_p3 = por %p1063_p13, %p1062_p12 }
  0x29   : > { %p1060_p11 = pneg %p1059_p10 }
  0x2b   : > { %p1065_p5 = pnand %p1064_p3, %p1060_p11 }
  0x2d   : > { %1068 = shalt.err (!%p1065_p5)
}
  0x2e   : > { %s1484_s9 = smov 4   ;;  %s1485_s14 = smov 64  }
  0x2f   : > { %904 = dma.hbm_to_vmem [thread:$0]  (!%p1306_p7), %s284_s11, 256, %s286_s17, %s273_s19, %s1485_s14, %s1485_s14, %s1484_s9  }
  0x30   : > { %297 = sbr.rel (%p1255_p8) target bundleno = 760 (0x2f8), region = 48  ;;  %s1326_s10 = sand.u32 (!%p1255_p8), 1, %s1150_s25  }
  0x31   : > { %s838_s20 = sshll.u32 (!%p1255_p8), %s1326_s10, 4  ;;  %s300_s1 = scalar_lea.sflag (!%p1255_p8), [#allocation3], %s1326_s10 }
  0x32   : > { %s303_s23 = scalar_lea.vmem (!%p1255_p8), [#allocation2], %s838_s20 }
  0x35   : > { %1129 = dma.done.wait (%p1242_p4), %s300_s1, 256  }
  0x36   : > { %1131 = vsyncadd (%p1242_p4), %s300_s1, 4294967040 }
  0x37   : > { %1133 = dma.done.wait (%p46_p1), [#allocation6], 896  }
  0x38   : > { %1135 = vsyncadd (%p46_p1), [#allocation6], 4294966400 }
  0x39   : > { %1137 = dma.done.wait (%p46_p1), [#allocation9], 1024  }
  0x3a   : > { %1139 = vsyncadd (%p46_p1), [#allocation9], 4294966272  ;;  %v872_v0 = vld [vmem:[#allocation5 + $0x8] sm:$0xff]  ;;  %v871_v1 = vld [vmem:[#allocation5] sm:$0xff]  ;;  %vm382_vm0 = vcmask 261120   ;;  %s1167_s30 = smov 112  }
  0x3b   : > { %395 = vmatpush.bf16.msra.mxu0 %v872_v0  ;;  %873 = vmatpush.bf16.msra.mxu3 %v872_v0  ;;  %v869_v2 = vld [vmem:[%s303_s23] sm:$0xff]  ;;  %v870_v3 = vld [vmem:[%s303_s23 + $0x8] sm:$0xff]  ;;  %s1168_s12 = smov 120   ;;  %vm474_vm1 = vcmask 1045504   ;;  %s1169_s19 = smov 104   ;;  %vm517_vm2 = vcmask 1044480  }
  0x3c   : > { %vm431_vm3 = vcmask 1046528   ;;  %vm560_vm4 = vcmask 1043456   ;;  %s1170_s11 = smov 96   ;;  %vm456_vm5 = vcmask 129088   ;;  %vm454_vm6 = vcmask 130112   ;;  %s1171_s17 = smov 80  }
  0x3d   : > { %vm497_vm7 = vcmask 261312   ;;  %vm499_vm8 = vcmask 259264   ;;  %vm540_vm9 = vcmask 458112   ;;  %vm542_vm10 = vcmask 455040   ;;  %s842_s9 = sshll.u32 %s1326_s10, 1  ;;  %s864_s14 = sshll.u32 %s1233_s28, 1 }
  0x3e   : > { %vm583_vm11 = vcmask 720512   ;;  %vm585_vm12 = vcmask 716416   ;;  %vm605_vm13 = vcmask 1041409   ;;  %vm408_vm14 = vcmask 64512   ;;  %s723_s23 = scalar_lea.hbm %s1473_s7, %s864_s14  ;;  %s713_s21 = scalar_lea.sflag [#allocation4], %s1326_s10 }
  0x3f   : > { %396 = vmatpush.bf16.msra.mxu0 %v871_v1  ;;  %874 = vmatpush.bf16.msra.mxu3 %v871_v1  ;;  %vm631_vm15 = vcmask 130048   ;;  %s1104_s14 = scalar_lea.hbm %s1473_s7, 8 }
  0x42   : > { %859 = vmatmul.msk.bf16.vlgmr.msra.gmra.mxu0 %vm382_vm0, %v869_v2  ;;  %860 = vmatmul.msk.bf16.vlgmr.msra.gmra.mxu3 %vm382_vm0, %v870_v3 }
  0xbf   : > { %v1344_v4 = vpop.f32.mrf.mxu0 }
  0xc0   : > { %v475_v11 = vrot.slane %v1344_v4, 2  ;;  %v518_v15 = vrot.slane %v1344_v4, 3  ;;  %v432_v16 = vrot.slane %v1344_v4, 1  ;;  %v561_v22 = vrot.slane %v1344_v4, 4 }
  0xc5   : > { %v1346_v5 = vpop.f32.mrf.mxu3 }
  0xc6   : > { %v435_v19 = vrot.slane %v1346_v5, 1  ;;  %v521_v25 = vrot.slane %v1346_v5, 3  ;;  %v564_v28 = vrot.slane %v1346_v5, 4  ;;  %v478_v29 = vrot.slane %v1346_v5, 2 }
  0xc7   : > { %v1348_v6 = vpop.f32.mrf.mxu0 }
  0xc8   : > { %v476_v7 = vrot.slane %v1348_v6, 2  ;;  %v433_v8 = vrot.slane %v1348_v6, 1  ;;  %v519_v12 = vrot.slane %v1348_v6, 3  ;;  %v562_v20 = vrot.slane %v1348_v6, 4 }
  0xca   : > { %483 = vrot.lane.b32.xlu2 %v476_v7, %s1167_s30  ;;  %440 = vrot.lane.b32.xlu0 %v433_v8, %s1168_s12  ;;  %v477_v13 = vsel %vm474_vm1, %v475_v11, %v476_v7  ;;  %v520_v17 = vsel %vm517_vm2, %v518_v15, %v519_v12  ;;  %v434_v18 = vsel %vm431_vm3, %v432_v16, %v433_v8 }
  0xcb   : > { %v563_v24 = vsel %vm560_vm4, %v561_v22, %v562_v20 }
  0xcd   : > { %v1354_v9 = vpop.f32.mrf.mxu3 }
  0xce   : > { %v436_v10 = vrot.slane %v1354_v9, 1  ;;  %v479_v14 = vrot.slane %v1354_v9, 2  ;;  %v522_v23 = vrot.slane %v1354_v9, 3  ;;  %v565_v26 = vrot.slane %v1354_v9, 4 }
  0xd0   : > { %444 = vrot.lane.b32.xlu1 %v436_v10, %s1168_s12  ;;  %v437_v21 = vsel %vm431_vm3, %v435_v19, %v436_v10  ;;  %v523_v27 = vsel %vm517_vm2, %v521_v25, %v522_v23  ;;  %v566_v30 = vsel %vm560_vm4, %v564_v28, %v565_v26  ;;  %v480_v31 = vsel %vm474_vm1, %v478_v29, %v479_v14 }
  0xd1   : > { %vm633_vm1 = vcmask 195584   ;;  %vm651_vm2 = vcmask 326656   ;;  %vm687_vm3 = vcmask 523264  }
  0xd2   : > { %481 = vrot.lane.b32.xlu2 %v477_v13, %s1167_s30  ;;  %526 = vrot.lane.b32.xlu0 %v519_v12, %s1169_s19 }
  0xd8   : > { %487 = vrot.lane.b32.xlu1 %v479_v14, %s1167_s30 }
  0xda   : > { %524 = vrot.lane.b32.xlu2 %v520_v17, %s1169_s19  ;;  %438 = vrot.lane.b32.xlu0 %v434_v18, %s1168_s12 }
  0xe0   : > { %442 = vrot.lane.b32.xlu1 %v437_v21, %s1168_s12 }
  0xe2   : > { %530 = vrot.lane.b32.xlu2 %v522_v23, %s1169_s19  ;;  %567 = vrot.lane.b32.xlu0 %v563_v24, %s1170_s11 }
  0xe8   : > { %528 = vrot.lane.b32.xlu1 %v523_v27, %s1169_s19 }
  0xea   : > { %571 = vrot.lane.b32.xlu2 %v566_v30, %s1170_s11  ;;  %485 = vrot.lane.b32.xlu0 %v480_v31, %s1167_s30 }
  0xf0   : > { %569 = vrot.lane.b32.xlu1 %v562_v20, %s1170_s11 }
  0xf2   : > { %573 = vrot.lane.b32.xlu0 %v565_v26, %s1170_s11 }
 0x124   : > { %v484_v32 = vpop.permute.xlu2 %483 }
 0x12c   : > { %v482_v35 = vpop.permute.xlu2 %481 }
 0x134   : > { %v525_v41 = vpop.permute.xlu2 %524 }
 0x13c   : > { %v441_v33 = vpop.permute.xlu0 %440  ;;  %v531_v2 = vpop.permute.xlu2 %530 }
 0x13d   : > { %v451_v37 = vadd.f32 %v441_v33, %v1348_v6 }
 0x13f   : > { %v494_v42 = vadd.f32 %v484_v32, %v451_v37  ;;  %v457_v43 = vsel %vm456_vm5, %v451_v37, -inf }
 0x141   : > { %v500_v51 = vsel %vm499_vm8, %v494_v42, -inf }
 0x142   : > { %v445_v34 = vpop.permute.xlu1 %444 }
 0x143   : > { %v453_v48 = vadd.f32 %v445_v34, %v1354_v9 }
 0x144   : > { %v527_v36 = vpop.permute.xlu0 %526  ;;  %v572_v31 = vpop.permute.xlu2 %571 }
 0x145   : > { %v537_v46 = vadd.f32 %v527_v36, %v494_v42  ;;  %v466_v60 = vsel %vm456_vm5, %v453_v48, -inf }
 0x147   : > { %v543_v57 = vsel %vm542_vm10, %v537_v46, -inf }
 0x14a   : > { %v488_v38 = vpop.permute.xlu1 %487 }
 0x14b   : > { %v496_v7 = vadd.f32 %v488_v38, %v453_v48 }
 0x14c   : > { %v439_v39 = vpop.permute.xlu0 %438 }
 0x14d   : > { %v450_v40 = vadd.f32 %v439_v39, %v1344_v4  ;;  %v539_v18 = vadd.f32 %v531_v2, %v496_v7  ;;  %v509_v21 = vsel %vm499_vm8, %v496_v7, -inf }
 0x14f   : > { %v455_v44 = vsel %vm454_vm6, %v450_v40, -inf  ;;  %v493_v45 = vadd.f32 %v482_v35, %v450_v40  ;;  %v552_v30 = vsel %vm542_vm10, %v539_v18, -inf }
 0x150   : > { %v458_v47 = vmax.f32 %v455_v44, %v457_v43 }
 0x151   : > { %v536_v49 = vadd.f32 %v525_v41, %v493_v45  ;;  %v498_v50 = vsel %vm497_vm7, %v493_v45, -inf }
 0x152   : > { %v459_v52 = vrot.slane %v458_v47, 4  ;;  %v443_v53 = vpop.permute.xlu1 %442  ;;  %v501_v56 = vmax.f32 %v498_v50, %v500_v51 }
 0x153   : > { %v452_v54 = vadd.f32 %v443_v53, %v1346_v5  ;;  %v541_v55 = vsel %vm540_vm9, %v536_v49, -inf }
 0x154   : > { %v460_v58 = vmax.f32 %v458_v47, %v459_v52  ;;  %v568_v59 = vpop.permute.xlu0 %567  ;;  %v544_v62 = vmax.f32 %v541_v55, %v543_v57  ;;  %v502_v1 = vrot.slane %v501_v56, 4 }
 0x155   : > { %v465_v61 = vsel %vm454_vm6, %v452_v54, -inf  ;;  %v579_v28 = vadd.f32 %v568_v59, %v536_v49 }
 0x156   : > { %v461_v63 = vrot.slane %v460_v58, 2  ;;  %v467_v0 = vmax.f32 %v465_v61, %v466_v60  ;;  %v545_v8 = vrot.slane %v544_v62, 4  ;;  %v503_v13 = vmax.f32 %v501_v56, %v502_v1 }
 0x157   : > { %v584_v44 = vsel %vm583_vm11, %v579_v28, -inf  ;;  %v644_v28 = vld [vmem:[#allocation7 + $0x10] sm:$0xff] }
 0x158   : > { %v468_v3 = vrot.slane %v467_v0, 4  ;;  %v462_v10 = vmax.f32 %v460_v58, %v461_v63  ;;  %v546_v16 = vmax.f32 %v544_v62, %v545_v8  ;;  %v504_v22 = vrot.slane %v503_v13, 2 }
 0x15a   : > { %v469_v11 = vmax.f32 %v467_v0, %v468_v3  ;;  %v529_v12 = vpop.permute.xlu1 %528  ;;  %v463_v19 = vrot.slane %v462_v10, 1  ;;  %v547_v27 = vrot.slane %v546_v16, 2  ;;  %v505_v39 = vmax.f32 %v503_v13, %v504_v22 }
 0x15b   : > { %v419_v22 = vsel %vm408_vm14, %v1354_v9, -inf  ;;  %v682_v9 = vld [vmem:[#allocation8 + $0x38] sm:$0xff] }
 0x15c   : > { %v470_v14 = vrot.slane %v469_v11, 2  ;;  %v486_v15 = vpop.permute.xlu0 %485  ;;  %v464_v32 = vmax.f32 %v462_v10, %v463_v19  ;;  %v548_v48 = vmax.f32 %v546_v16, %v547_v27  ;;  %v506_v53 = vrot.slane %v505_v39, 1  ;;  %699 = vmatpush.msra.mxu2 %v682_v9 }
 0x15d   : > { %v495_v17 = vadd.f32 %v486_v15, %v452_v54 }
 0x15e   : > { %v471_v20 = vmax.f32 %v469_v11, %v470_v14  ;;  %v549_v58 = vrot.slane %v548_v48, 1  ;;  %v507_v63 = vmax.f32 %v505_v39, %v506_v53 }
 0x15f   : > { %v508_v23 = vsel %vm497_vm7, %v495_v17, -inf  ;;  %v538_v24 = vadd.f32 %v529_v12, %v495_v17 }
 0x160   : > { %v472_v25 = vrot.slane %v471_v20, 1  ;;  %v510_v26 = vmax.f32 %v508_v23, %v509_v21  ;;  %v550_v7 = vmax.f32 %v548_v48, %v549_v58  ;;  %v645_v21 = vld [vmem:[#allocation7 + $0x18] sm:$0xff]  ;;  %v410_v23 = vsel %vm408_vm14, %v1348_v6, -inf  ;;  %v680_v6 = vld [vmem:[#allocation8 + $0x28] sm:$0xff] }
 0x161   : > { %v551_v29 = vsel %vm540_vm9, %v538_v24, -inf  ;;  %v581_v37 = vadd.f32 %v572_v31, %v538_v24  ;;  %v418_v24 = vsel %vm408_vm14, %v1346_v5, -inf  ;;  %v642_v31 = vld [vmem:[#allocation7] sm:$0xff]  ;;  %v679_v5 = vld [vmem:[#allocation8 + $0x20] sm:$0xff]  ;;  %v962_v58 = vld [vmem:[%s1470_s4] ss:$0 sm:$0xff] }
 0x162   : > { %v473_v33 = vmax.f32 %v471_v20, %v472_v25  ;;  %v511_v34 = vrot.slane %v510_v26, 4  ;;  %v570_v35 = vpop.permute.xlu1 %569  ;;  %v553_v36 = vmax.f32 %v551_v29, %v552_v30  ;;  %v646_v20 = vld [vmem:[#allocation7 + $0x20] sm:$0xff]  ;;  %v420_v25 = vmax.f32 %v418_v24, %v419_v22  ;;  %v643_v30 = vld [vmem:[#allocation7 + $0x8] sm:$0xff] }
 0x163   : > { %v580_v38 = vadd.f32 %v570_v35, %v537_v46  ;;  %v594_v52 = vsel %vm583_vm11, %v581_v37, -inf  ;;  %666 = vmatpush.msra.mxu1 %v646_v20 }
 0x164   : > { %v512_v40 = vmax.f32 %v510_v26, %v511_v34  ;;  %v554_v41 = vrot.slane %v553_v36, 4  ;;  %v574_v42 = vpop.permute.xlu0 %573  ;;  %v1401_v43 = vsel %vm605_vm13, %v473_v33, %v464_v32  ;;  %v409_v26 = vsel %vm408_vm14, %v1344_v4, -inf  ;;  %v681_v33 = vld [vmem:[#allocation8 + $0x30] sm:$0xff]  ;;  %v678_v4 = vld [vmem:[#allocation8 + $0x18] sm:$0xff] }
 0x165   : > { %v586_v45 = vsel %vm585_vm12, %v580_v38, -inf  ;;  %v582_v47 = vadd.f32 %v574_v42, %v539_v18  ;;  %667 = vmatpush.msra.mxu1 %v645_v21  ;;  %v411_v27 = vmax.f32 %v409_v26, %v410_v23  ;;  %v421_v29 = vrot.slane %v420_v25, 4  ;;  %700 = vmatpush.msra.mxu2 %v681_v33  ;;  %v677_v38 = vld [vmem:[#allocation8 + $0x10] sm:$0xff] }
 0x166   : > { %v513_v49 = vrot.slane %v512_v40, 2  ;;  %v587_v50 = vmax.f32 %v584_v44, %v586_v45  ;;  %v555_v51 = vmax.f32 %v553_v36, %v554_v41 }
 0x167   : > { %v595_v46 = vsel %vm585_vm12, %v582_v47, -inf  ;;  %668 = vmatpush.msra.mxu1 %v644_v28  ;;  %v412_v32 = vrot.slane %v411_v27, 4  ;;  %v422_v34 = vmax.f32 %v420_v25, %v421_v29  ;;  %701 = vmatpush.msra.mxu2 %v680_v6 }
 0x168   : > { %v514_v54 = vmax.f32 %v512_v40, %v513_v49  ;;  %v588_v55 = vrot.slane %v587_v50, 4  ;;  %v556_v56 = vrot.slane %v555_v51, 2  ;;  %v596_v57 = vmax.f32 %v594_v52, %v595_v46 }
 0x169   : > { %669 = vmatpush.msra.mxu1 %v643_v30  ;;  %v413_v35 = vmax.f32 %v411_v27, %v412_v32  ;;  %v423_v36 = vrot.slane %v422_v34, 2  ;;  %702 = vmatpush.msra.mxu2 %v679_v5 }
 0x16a   : > { %v589_v59 = vmax.f32 %v587_v50, %v588_v55  ;;  %v597_v60 = vrot.slane %v596_v57, 4  ;;  %v515_v61 = vrot.slane %v514_v54, 1  ;;  %v557_v62 = vmax.f32 %v555_v51, %v556_v56  ;;  %v961_v51 = vld [vmem:[%s1468_s2] ss:$0 sm:$0xff] }
 0x16b   : > { %670 = vmatpush.msra.mxu1 %v642_v31  ;;  %v414_v37 = vrot.slane %v413_v35, 2  ;;  %v424_v39 = vmax.f32 %v422_v34, %v423_v36  ;;  %703 = vmatpush.msra.mxu2 %v678_v4 }
 0x16c   : > { %v590_v0 = vrot.slane %v589_v59, 2  ;;  %v598_v1 = vmax.f32 %v596_v57, %v597_v60  ;;  %v516_v2 = vmax.f32 %v514_v54, %v515_v61  ;;  %v558_v3 = vrot.slane %v557_v62, 1  ;;  %v676_v57 = vld [vmem:[#allocation8 + $0x8] sm:$0xff] }
 0x16d   : > { %v415_v40 = vmax.f32 %v413_v35, %v414_v37  ;;  %704 = vmatpush.msra.mxu2 %v677_v38  ;;  %v425_v41 = vrot.slane %v424_v39, 1  ;;  %v963_v61 = vld [vmem:[%s1472_s6] ss:$0 sm:$0xff] }
 0x16e   : > { %v591_v8 = vmax.f32 %v589_v59, %v590_v0  ;;  %v599_v10 = vrot.slane %v598_v1, 2  ;;  %v614_v11 = vsel %vm605_vm13, %v516_v2, %v507_v63  ;;  %v559_v12 = vmax.f32 %v557_v62, %v558_v3 }
 0x16f   : > { %615 = vrot.lane.b32.xlu1 %v614_v11, %s1168_s12  ;;  %v416_v42 = vrot.slane %v415_v40, 1  ;;  %v426_v44 = vmax.f32 %v424_v39, %v425_v41  ;;  %705 = vmatpush.msra.mxu2 %v676_v57 }
 0x170   : > { %v600_v13 = vmax.f32 %v598_v1, %v599_v10  ;;  %v620_v14 = vsel %vm605_vm13, %v559_v12, %v550_v7  ;;  %v592_v15 = vrot.slane %v591_v8, 1 }
 0x171   : > { %621 = vrot.lane.b32.xlu2 %v620_v14, %s1169_s19  ;;  %v417_v45 = vmax.f32 %v415_v40, %v416_v42  ;;  %s349_s19 = scalar_lea.vmem [#allocation10], %s842_s9 }
 0x172   : > { %v601_v16 = vrot.slane %v600_v13, 1  ;;  %v593_v17 = vmax.f32 %v591_v8, %v592_v15  ;;  %s725_s11 = sshll.u32 %s349_s19, 4  ;;  %s726_s11 = int_to_ptr.vmem [resolvable:$true] %s725_s11 }
 0x173   : > { %v606_v48 = vsel %vm605_vm13, %v426_v44, %v417_v45 }
 0x174   : > { %v602_v18 = vmax.f32 %v600_v13, %v601_v16  ;;  %v630_v49 = vsel %vm408_vm14, %v606_v48, %v1401_v43  ;;  %v675_v43 = vld [vmem:[#allocation8] sm:$0xff] }
 0x175   : > { %706 = vmatpush.msra.mxu2 %v675_v43 }
 0x176   : > { %v626_v19 = vsel %vm605_vm13, %v602_v18, %v593_v17 }
 0x177   : > { %627 = vrot.lane.b32.xlu0 %v626_v19, %s1171_s17  ;;  %s727_s17 = sshll.u32 %s723_s23, 4  ;;  %s728_s17 = int_to_ptr.hbm [resolvable:$true] %s727_s17 }
 0x178   : > { %s1098_s15 = sshra.s32 %s728_s17, 4  ;;  %s1099_s15 = int_to_ptr.hbm [resolvable:$true] %s1098_s15 }
 0x179   : > { %s1100_s28 = scalar_lea.hbm %s1099_s15, 2  ;;  %p1105_p7 = scmp.lt.s32.totalorder %s1099_s15, %s1473_s7 }
 0x17a   : > { %p1101_p1 = scmp.ne.s32.totalorder %s1099_s15, %s1100_s28  ;;  %p1106_p2 = scmp.lt.s32.totalorder %s1104_s14, %s1100_s28 }
 0x17c   : > { %p1102_p4 = pnand %p1101_p1, %p1296_p0  ;;  %p1107_p9 = por %p1106_p2, %p1105_p7 }
 0x17e   : > { %p1103_p8 = pneg %p1102_p4 }
 0x180   : > { %p1108_p10 = pnand %p1107_p9, %p1103_p8 }
 0x1cb   : > { %v622_v52 = vpop.permute.xlu2 %621 }
 0x1e1   : > { %v616_v47 = vpop.permute.xlu1 %615 }
 0x1e2   : > { %v632_v50 = vsel %vm631_vm15, %v630_v49, %v616_v47 }
 0x1e3   : > { %v634_v53 = vsel %vm633_vm1, %v632_v50, %v622_v52 }
 0x1e9   : > { %v628_v46 = vpop.permute.xlu0 %627 }
 0x1ea   : > { %v635_v54 = vsel %vm382_vm0, %v634_v53, %v628_v46 }
 0x1eb   : > { %v640_v55 = vadd.f32 %v961_v51, %v635_v54 }
 0x1ed   : > { %v641_v56 = vmax.f32 %v640_v55, 0.0 }
 0x1ef   : > { %861 = vmatmul.msk.f32.vlgmr.msra.gmra.mxu1 %vm651_vm2, %v641_v56 }
 0x26c   : > { %v672_v59 = vpop.f32.mrf.mxu1 }
 0x26d   : > { %v673_v60 = vadd.f32 %v962_v58, %v672_v59 }
 0x26f   : > { %862 = vmatmul.msk.f32.vlgmr.msra.gmra.mxu2 %vm687_vm3, %v673_v60 }
 0x2f2   : > { %v708_v62 = vpop.f32.mrf.mxu2 }
 0x2f3   : > { %v709_v63 = vadd.f32 %v963_v61, %v708_v62 }
 0x2f5   : > { %711 = vst [vmem:[%s349_s19] sm:$0x3] %v709_v63 }
 0x2f6   : > { %1111 = shalt.err (!%p1108_p10)
}
 0x2f7   : > { %889 = dma.vmem_to_hbm [thread:$0]  (%p1296_p0), %s726_s11, 32, %s728_s17, %s713_s21  }
 0x2f8 PF: > { %p916_p11 = scmp.ge.s32.totalorder %s1158_s27, 2  ;;  %s739_s10 = sand.u32 1, %s1146_s24  }
 0x2f9   : > { %s740_s1 = scalar_lea.sflag [#allocation4], %s739_s10 }
 0x2fa   : > { %p906_p12 = pnand %p916_p11, %p1247_p6 }
 0x2fc   : > { %p907_p13 = pneg %p906_p12 }
 0x2fe   : > { %1141 = dma.done.wait (%p907_p13), %s740_s1, 32  }
 0x2ff   : > { %1143 = vsyncadd (%p907_p13), %s740_s1, 4294967264  ;;  %p22_p3 = scmp.ge.s32.totalorder %s1283_s16, 6   ;;  %s1486_s24 = smov %s1150_s25 }
 0x300   : > { %s1487_s25 = smov %s1154_s26  ;;  %s1488_s26 = smov %s1292_s18 }
 0x301   : > { %s1489_s27 = smov %s1283_s16  ;;  %24 = sbr.rel (!%p22_p3) target bundleno = 9 (0x9), region = 105 }
 0x306   :  { %746 = vsyncpa [#allocation3], 1 }
 0x307   :  { %748 = vsyncpa [#allocation3 + $0x1], 1 }
 0x308   :  { %749 = vsyncpa [#allocation6], 1 }
 0x309   :  { %750 = vsyncpa [#allocation9], 1 }
 0x30a   :  { %751 = vsyncpa [#allocation4], 1 }
 0x30b   :  { %753 = vsyncpa [#allocation4 + $0x1], 1 }

</bundles_post_ra>
